<compile_context>
chip_gen: v5e
topology: v5e:2x2
jax: 0.10.0
libtpu: 0.0.40
codegen_flags: <defaults>
</compile_context>

<pallas_src>
import functools
import math

import jax
import jax.numpy as jnp
from jax.experimental import pallas as pl
from jax.experimental.pallas import tpu as pltpu


def _layernorm_kernel(x_ref, g_ref, b_ref, o_ref, *, eps, feat, feat_pad):
    # x_ref: (TM, F_pad) tile of rows; g_ref / b_ref: (1, F_pad) params.
    x = x_ref[...].astype(jnp.float32)

    if feat_pad != feat:
        # Padded lanes hold zeros in x (fine for the sum), but must be masked
        # out of the centered second moment.
        lane = jax.lax.broadcasted_iota(jnp.int32, (1, feat_pad), 1)
        valid = lane < feat
    else:
        valid = None

    # Two-pass statistics, f32 accumulation (numerically stable).
    mean = jnp.sum(x, axis=-1, keepdims=True) * jnp.float32(1.0 / feat)
    diff = x - mean
    diff_m = jnp.where(valid, diff, 0.0) if valid is not None else diff
    # Unbiased variance (ddof=1) -> matches torch.Tensor.std default.
    # (feat == 1 yields 0/0 = NaN at runtime, same as torch.)
    var = jnp.sum(diff_m * diff_m, axis=-1, keepdims=True) / jnp.float32(feat - 1)
    std = jnp.sqrt(var)
    # Exact per-row reciprocal (approx=True was outside the required tolerance).
    inv = pl.reciprocal(std + jnp.float32(eps), approx=False)

    gamma = g_ref[...].astype(jnp.float32)
    beta = b_ref[...].astype(jnp.float32)
    # TODO(synk): for bf16 inputs on v6e/v7x, the normalize+affine stream could
    # stay in bf16 (stats in f32) to halve the (TM,F) f32 temporaries.
    o_ref[...] = ((diff * inv) * gamma + beta).astype(o_ref.dtype)


def _device_kind():
    try:
        return jax.devices()[0].device_kind.lower()
    except Exception:
        return ""


def _vmem_capacity_bytes():
    """Per-core VMEM capacity, with a chip-keyed fallback (not a blanket 64 MiB)."""
    try:
        info = pltpu.get_tpu_info()
        cap = int(getattr(info, "vmem_capacity_bytes", 0) or 0)
        if cap > 0:
            return cap
    except Exception:
        pass
    kind = _device_kind()
    if "v7" in kind:
        return 64 * 1024 * 1024
    if "v5" in kind or "v6" in kind:
        return 128 * 1024 * 1024
    return 64 * 1024 * 1024  # unknown chip: stay conservative


def layer_norm(x, a_2, b_2, eps=1e-6, block_rows=None):
    """LayerNorm over the last axis of x. a_2, b_2 have shape (features,)."""
    orig_shape = x.shape
    feat = orig_shape[-1]
    rows = math.prod(orig_shape[:-1]) if len(orig_shape) > 1 else 1
    x2d = x.reshape(rows, feat)

    # Lane-dense layout: pad the feature axis to a multiple of 128 so output
    # stores are unmasked `vst` (padded lanes masked out of the statistics).
    feat_pad = ((feat + 127) // 128) * 128
    if feat_pad != feat:
        x2d = jnp.pad(x2d, ((0, 0), (0, feat_pad - feat)))
        g2d = jnp.pad(a_2.reshape(1, feat), ((0, 0), (0, feat_pad - feat)))
        be2d = jnp.pad(b_2.reshape(1, feat), ((0, 0), (0, feat_pad - feat)))
    else:
        g2d = a_2.reshape(1, feat)
        be2d = b_2.reshape(1, feat)

    itemsize = int(jnp.dtype(x.dtype).itemsize)
    # Sublane packing multiple: 8 rows for f32, 16 for bf16, 32 for 8-bit.
    sub = max(8, 32 // max(itemsize, 1))

    vmem_cap = _vmem_capacity_bytes()            # 128 MiB v5e/v6e, 64 MiB v7x
    vmem_limit = (vmem_cap * 3) // 4             # leave headroom for the compiler

    # Conservative per-row VMEM footprint: double-buffered input + output tiles
    # plus ~4 f32-sized in-kernel temporaries; budget ~1/3 of the scoped limit.
    per_row_bytes = 2 * 2 * feat_pad * itemsize + 4 * feat_pad * 4
    budget_rows = max(sub, (vmem_limit // 3) // per_row_bytes)

    if block_rows is None:
        # Block-byte target: ~4 MiB per (tm, feat) input block hits the
        # measured ~86% HBM-roofline plateau and amortizes grid-step overhead.
        target_block_bytes = 4 * 1024 * 1024
        tm = max(sub, target_block_bytes // max(feat_pad * itemsize, 1))
        tm = min(tm, budget_rows)
        # v7x: keep >= 8 grid blocks when rows allow so both TensorCores
        # (megacore, dimension_semantics="parallel") share the 3.2 TB/s HBM.
        min_blocks = 8 if "v7" in _device_kind() else 1
        if min_blocks > 1:
            tm = min(tm, max(sub, pl.cdiv(pl.cdiv(rows, min_blocks), sub) * sub))
    else:
        tm = min(block_rows, budget_rows)        # validate user value vs budget
    tm = max(sub, (tm // sub) * sub)             # multiple of sublane packing
    tm = min(tm, pl.cdiv(rows, sub) * sub)       # never taller than the input
    # TODO(synk): extremely wide feat could still exceed VMEM at tm=sub; a
    # feature-chunked two-pass variant would be needed for that regime.

    kernel = functools.partial(
        _layernorm_kernel, eps=eps, feat=feat, feat_pad=feat_pad)

    out = pl.pallas_call(
        kernel,
        out_shape=jax.ShapeDtypeStruct((rows, feat_pad), x.dtype),
        grid_spec=pltpu.PrefetchScalarGridSpec(
            num_scalar_prefetch=0,
            grid=(pl.cdiv(rows, tm),),           # ragged last block handled by Pallas
            in_specs=[
                pl.BlockSpec((tm, feat_pad), lambda i: (i, 0)),
                pl.BlockSpec((1, feat_pad), lambda i: (0, 0)),
                pl.BlockSpec((1, feat_pad), lambda i: (0, 0)),
            ],
            out_specs=pl.BlockSpec((tm, feat_pad), lambda i: (i, 0)),
        ),
        compiler_params=pltpu.CompilerParams(
            dimension_semantics=("parallel",),
            vmem_limit_bytes=int(vmem_limit),
        ),
    )(x2d, g2d, be2d)

    if feat_pad != feat:
        out = out[:, :feat]
    return out.reshape(orig_shape)


if __name__ == "__main__":
    # Small transformer-style input; hidden=128 keeps the normalized axis
    # lane-dense so no padding path is needed for this shape.
    key = jax.random.PRNGKey(0)
    batch, seq, hidden = 2, 8, 128
    x = jax.random.normal(key, (batch, seq, hidden), dtype=jnp.float32)

    # Deterministic parameter init, matching nn.Parameter(torch.ones/zeros).
    a_2 = jnp.ones((hidden,), dtype=jnp.float32)
    b_2 = jnp.zeros((hidden,), dtype=jnp.float32)
    eps = 1e-6

    y = layer_norm(x, a_2, b_2, eps=eps)
    y = jax.block_until_ready(y)

    # Reference in plain JAX: unbiased std (ddof=1), eps added to the std.
    mean = jnp.mean(x, axis=-1, keepdims=True)
    std = jnp.std(x, axis=-1, keepdims=True, ddof=1)
    ref = a_2 * (x - mean) / (std + eps) + b_2

    max_err = jnp.max(jnp.abs(y - ref))
    assert jnp.allclose(y, ref, atol=1e-5, rtol=1e-5), (
        f"mismatch vs reference, max|err|={max_err}")

    print("KERNEL_OK")
</pallas_src>

<mosaic_0001>
module attributes {stable_mosaic.version = 11 : i64} {
  func.func @_layernorm_kernel(%arg0: i32, %arg1: memref<16x128xf32, #tpu.memory_space<vmem>>, %arg2: memref<1x128xf32, #tpu.memory_space<vmem>>, %arg3: memref<1x128xf32, #tpu.memory_space<vmem>>, %arg4: memref<16x128xf32, #tpu.memory_space<vmem>>) attributes {dimension_semantics = [#tpu.dimension_semantics<parallel>], iteration_bounds = array<i64: 1>, scalar_prefetch = 0 : i64, scratch_operands = 0 : i64, tpu.core_type = #tpu.core_type<tc>, window_params = [{transform_indices = @transform_0, window_bounds = array<i64: 16, 128>}, {pipeline_mode = #tpu.pipeline_mode<synchronous>, transform_indices = @transform_1, window_bounds = array<i64: 1, 128>}, {pipeline_mode = #tpu.pipeline_mode<synchronous>, transform_indices = @transform_2, window_bounds = array<i64: 1, 128>}, {transform_indices = @transform_3, window_bounds = array<i64: 16, 128>}]} {
    %c0 = arith.constant 0 : index
    %c0_0 = arith.constant 0 : index
    %0 = vector.load %arg1[%c0, %c0_0] : memref<16x128xf32, #tpu.memory_space<vmem>>, vector<16x128xf32>
    %cst = arith.constant dense<0.000000e+00> : vector<16xf32>
    %1 = vector.multi_reduction <add>, %0, %cst [1] : vector<16x128xf32> to vector<16xf32>
    %2 = vector.shape_cast %1 : vector<16xf32> to vector<16x1xf32>
    %cst_1 = arith.constant 7.812500e-03 : f32
    %3 = vector.broadcast %cst_1 : f32 to vector<16x1xf32>
    %4 = arith.mulf %2, %3 : vector<16x1xf32>
    %5 = vector.broadcast %4 : vector<16x1xf32> to vector<16x128xf32>
    %6 = arith.subf %0, %5 : vector<16x128xf32>
    %7 = arith.mulf %6, %6 : vector<16x128xf32>
    %cst_2 = arith.constant dense<0.000000e+00> : vector<16xf32>
    %8 = vector.multi_reduction <add>, %7, %cst_2 [1] : vector<16x128xf32> to vector<16xf32>
    %9 = vector.shape_cast %8 : vector<16xf32> to vector<16x1xf32>
    %cst_3 = arith.constant 1.270000e+02 : f32
    %10 = vector.broadcast %cst_3 : f32 to vector<16x1xf32>
    %11 = arith.divf %9, %10 : vector<16x1xf32>
    %12 = math.sqrt %11 : vector<16x1xf32>
    %cst_4 = arith.constant 9.99999997E-7 : f32
    %13 = vector.broadcast %cst_4 : f32 to vector<16x1xf32>
    %14 = arith.addf %12, %13 : vector<16x1xf32>
    %15 = tpu.reciprocal %14 : vector<16x1xf32> -> vector<16x1xf32>
    %c0_5 = arith.constant 0 : index
    %c0_6 = arith.constant 0 : index
    %16 = vector.load %arg2[%c0_5, %c0_6] : memref<1x128xf32, #tpu.memory_space<vmem>>, vector<1x128xf32>
    %c0_7 = arith.constant 0 : index
    %c0_8 = arith.constant 0 : index
    %17 = vector.load %arg3[%c0_7, %c0_8] : memref<1x128xf32, #tpu.memory_space<vmem>>, vector<1x128xf32>
    %18 = vector.broadcast %15 : vector<16x1xf32> to vector<16x128xf32>
    %19 = arith.mulf %6, %18 : vector<16x128xf32>
    %20 = vector.broadcast %16 : vector<1x128xf32> to vector<16x128xf32>
    %21 = arith.mulf %19, %20 : vector<16x128xf32>
    %22 = vector.broadcast %17 : vector<1x128xf32> to vector<16x128xf32>
    %23 = arith.addf %21, %22 : vector<16x128xf32>
    %c0_9 = arith.constant 0 : index
    %c0_10 = arith.constant 0 : index
    %24 = vector.load %arg4[%c0_9, %c0_10] : memref<16x128xf32, #tpu.memory_space<vmem>>, vector<16x128xf32>
    tpu.vector_store %arg4[%c0_9, %c0_10], %23 {strides = array<i32>} : memref<16x128xf32, #tpu.memory_space<vmem>>, vector<16x128xf32>,
    return
  }
  func.func @transform_0(%arg0: i32) -> (i32, i32) {
    %c0_i32 = arith.constant 0 : i32
    %c0_i32_0 = arith.constant 0 : i32
    return %arg0, %c0_i32 : i32, i32
  }
  func.func @transform_1(%arg0: i32) -> (i32, i32) {
    %c0_i32 = arith.constant 0 : i32
    %c0_i32_0 = arith.constant 0 : i32
    %c0_i32_1 = arith.constant 0 : i32
    return %c0_i32, %c0_i32_0 : i32, i32
  }
  func.func @transform_2(%arg0: i32) -> (i32, i32) {
    %c0_i32 = arith.constant 0 : i32
    %c0_i32_0 = arith.constant 0 : i32
    %c0_i32_1 = arith.constant 0 : i32
    return %c0_i32, %c0_i32_0 : i32, i32
  }
  func.func @transform_3(%arg0: i32) -> (i32, i32) {
    %c0_i32 = arith.constant 0 : i32
    %c0_i32_0 = arith.constant 0 : i32
    return %arg0, %c0_i32 : i32, i32
  }
}

</mosaic_0001>

<bundles_post_ra>
// kernel: tpu_custom_call.1
= control target key start
LH: loop header
LB: loop body
LE: loop exit
PB: predicated region body
PF: predicated region fallthrough
CT: control target
= control target key end

     0   :  { %8 = vsyncpa [#allocation3], 0  ;;  %s310_s0 = inlined_call_operand.hbm [shape: f32[16,128], index: 0, kind: input, shape index: {}]   ;;  %s311_s1 = inlined_call_operand.hbm [shape: f32[1,128], index: 1, kind: input, shape index: {}]   ;;  %s312_s2 = inlined_call_operand.vmem [shape: f32[1,128], index: 2, kind: input, shape index: {}]   ;;  %s313_s3 = inlined_call_operand.hbm [shape: f32[16,128], index: 3, kind: output, shape index: {}]  }
   0x1   :  { %9 = vsyncpa [#allocation6], 0 }
   0x2   :  { %10 = vsyncpa [#allocation4], 0  ;;  %s15_s14 = sshll.u32 %s310_s0, 4  ;;  %s256_s15 = smov [#allocation2]   ;;  %s16_s14 = int_to_ptr.hbm [resolvable:$true] %s15_s14 }
   0x3   :  { %s17_s16 = sshll.u32 %s256_s15, 4  ;;  %s29_s19 = sshll.u32 %s311_s1, 4  ;;  %s18_s16 = int_to_ptr.vmem [resolvable:$true] %s17_s16  ;;  %s30_s19 = int_to_ptr.hbm [resolvable:$true] %s29_s19 }
   0x4   :  { %s257_s20 = smov 128   ;;  %s258_s21 = smov 8  }
   0x5   :  { %23 = dma.hbm_to_vmem [thread:$0]  %s16_s14, 256, %s18_s16, [#allocation3], %s257_s20, %s257_s20, %s258_s21  }
   0x6   :  { %s259_s22 = smov [#allocation5]  }
   0x7   :  { %s31_s23 = sshll.u32 %s259_s22, 4  ;;  %s32_s23 = int_to_ptr.vmem [resolvable:$true] %s31_s23 }
   0x8   :  { %34 = dma.hbm_to_vmem [thread:$0]  %s30_s19, 16, %s32_s23, [#allocation6]  }
   0x9   :  { %250 = dma.done.wait [#allocation3], 256  }
   0xa   :  { %251 = vsyncadd [#allocation3], 4294967040 }
   0xb   :  { %252 = dma.done.wait [#allocation6], 16  }
   0xc   :  { %253 = vsyncadd [#allocation6], 4294967280  ;;  %v45_v0 = vld [vmem:[#allocation2] sm:$0xff]  ;;  %v46_v1 = vld [vmem:[#allocation2 + $0x8] sm:$0xff]  ;;  %v260_v10 = vmov 127.0   ;;  %s261_s24 = smov [#allocation7]  }
   0xd   :  { %47 = vadd.xlane.f32.xlu0 %v45_v0  ;;  %168 = vrcp.f32 %v260_v10  ;;  %v166_v54 = vld [vmem:[#allocation5] ss:$0 sm:$0xff]  ;;  %v167_v58 = vld [vmem:[%s312_s2] ss:$0 sm:$0xff]  ;;  %s144_s25 = sshll.u32 %s261_s24, 4  ;;  %s146_s27 = sshll.u32 %s313_s3, 4  ;;  %s145_s25 = int_to_ptr.vmem [resolvable:$true] %s144_s25  ;;  %s147_s27 = int_to_ptr.hbm [resolvable:$true] %s146_s27 }
  0x13   :  { %v169_v11 = vpop.eup %168 }
  0x14   :  { %v62_v12 = vmul.f32 127.0, %v169_v11  ;;  %vm66_vm0 = vweird.f32 %v169_v11 }
  0x15   :  { %49 = vadd.xlane.f32.xlu0 %v46_v1 }
  0x16   :  { %v63_v13 = vsub.f32 1.0, %v62_v12 }
  0x18   :  { %v64_v14 = vmul.f32 %v169_v11, %v63_v13 }
  0x1a   :  { %v65_v15 = vadd.f32 %v169_v11, %v64_v14 }
  0x1c   :  { %v67_v16 = vsel %vm66_vm0, %v169_v11, %v65_v15 }
  0x80   :  { %v48_v2 = vpop.xlane.xlu0 %47 }
  0x81   :  { %v51_v3 = vmul.f32 0.0078125, %v48_v2 }
  0x83   :  { %v291_v4 = vsub.f32 %v45_v0, %v51_v3 }
  0x85   :  { %v55_v5 = vmul.f32 %v291_v4, %v291_v4 }
  0x87   :  { %57 = vadd.xlane.f32.xlu1 %v55_v5 }
  0x88   :  { %v50_v6 = vpop.xlane.xlu0 %49 }
  0x89   :  { %v52_v7 = vmul.f32 0.0078125, %v50_v6 }
  0x8b   :  { %v295_v8 = vsub.f32 %v46_v1, %v52_v7 }
  0x8d   :  { %v56_v9 = vmul.f32 %v295_v8, %v295_v8 }
  0x8f   :  { %59 = vadd.xlane.f32.xlu1 %v56_v9 }
  0xfa   :  { %v58_v17 = vpop.xlane.xlu1 %57 }
  0xfb   :  { %v68_v18 = vmul.f32 %v67_v16, %v58_v17 }
  0xfd   :  { %170 = vrsqrt.f32 %v68_v18  ;;  %vm77_vm1 = vcmp.eq.f32.partialorder %v68_v18, inf  ;;  %v80_v31 = vand.u32 2147483648, %v68_v18  ;;  %vm79_vm2 = vcmp.eq.f32.partialorder %v68_v18, 0.0 }
 0x102   :  { %v60_v19 = vpop.xlane.xlu1 %59 }
 0x103   :  { %v171_v20 = vpop.eup %170  ;;  %v69_v21 = vmul.f32 %v67_v16, %v60_v19 }
 0x104   :  { %v71_v22 = vmul.f32 %v171_v20, %v68_v18 }
 0x105   :  { %172 = vrsqrt.f32 %v69_v21  ;;  %vm89_vm3 = vcmp.eq.f32.partialorder %v69_v21, inf  ;;  %v92_v39 = vand.u32 2147483648, %v69_v21  ;;  %vm91_vm4 = vcmp.eq.f32.partialorder %v69_v21, 0.0 }
 0x106   :  { %v72_v23 = vmul.f32 %v171_v20, %v71_v22 }
 0x108   :  { %v73_v24 = vmul.f32 0.5, %v72_v23 }
 0x10a   :  { %v74_v25 = vsub.f32 1.5, %v73_v24 }
 0x10b   :  { %v173_v26 = vpop.eup %172 }
 0x10c   :  { %v75_v27 = vmul.f32 %v171_v20, %v74_v25  ;;  %v83_v28 = vmul.f32 %v173_v26, %v69_v21 }
 0x10e   :  { %v76_v29 = vmul.f32 %v75_v27, %v68_v18  ;;  %v84_v30 = vmul.f32 %v173_v26, %v83_v28 }
 0x110   :  { %v78_v32 = vsel %vm77_vm1, %v68_v18, %v76_v29  ;;  %v85_v33 = vmul.f32 0.5, %v84_v30 }
 0x111   :  { %v81_v34 = vsel %vm79_vm2, %v80_v31, %v78_v32 }
 0x112   :  { %v94_v35 = vadd.f32 1e-06, %v81_v34  ;;  %v86_v36 = vsub.f32 1.5, %v85_v33 }
 0x114   :  { %174 = vrcp.f32 %v94_v35  ;;  %v87_v37 = vmul.f32 %v173_v26, %v86_v36  ;;  %v107_v46 = vand.u32 2147483648, %v94_v35  ;;  %v105_v48 = vand.u32 2147483647, %v94_v35 }
 0x115   :  { %vm101_vm6 = vweird.f32 %v94_v35 }
 0x116   :  { %v88_v38 = vmul.f32 %v87_v37, %v69_v21  ;;  %v108_v51 = vor.u32 1.1754944e-38, %v107_v46  ;;  %vm106_vm8 = vcmp.eq.f32.partialorder %v105_v48, 8.507059e+37 }
 0x118   :  { %v90_v40 = vsel %vm89_vm3, %v69_v21, %v88_v38 }
 0x119   :  { %v93_v41 = vsel %vm91_vm4, %v92_v39, %v90_v40 }
 0x11a   :  { %v175_v42 = vpop.eup %174  ;;  %v95_v43 = vadd.f32 1e-06, %v93_v41 }
 0x11b   :  { %v97_v44 = vmul.f32 %v175_v42, %v94_v35  ;;  %vm102_vm5 = vweird.f32 %v175_v42 }
 0x11c   :  { %176 = vrcp.f32 %v95_v43  ;;  %vm103_vm7 = vmor %vm101_vm6, %vm102_vm5  ;;  %v121_v59 = vand.u32 2147483648, %v95_v43  ;;  %v119_v61 = vand.u32 2147483647, %v95_v43  ;;  %vm115_vm10 = vweird.f32 %v95_v43 }
 0x11d   :  { %v98_v45 = vsub.f32 1.0, %v97_v44 }
 0x11e   :  { %v122_v1 = vor.u32 1.1754944e-38, %v121_v59  ;;  %vm120_vm12 = vcmp.eq.f32.partialorder %v119_v61, 8.507059e+37 }
 0x11f   :  { %v99_v47 = vmul.f32 %v175_v42, %v98_v45 }
 0x121   :  { %v100_v49 = vadd.f32 %v175_v42, %v99_v47 }
 0x122   :  { %v177_v50 = vpop.eup %176 }
 0x123   :  { %v104_v52 = vsel %vm103_vm7, %v175_v42, %v100_v49  ;;  %v111_v53 = vmul.f32 %v177_v50, %v95_v43  ;;  %vm116_vm9 = vweird.f32 %v177_v50 }
 0x124   :  { %v109_v55 = vsel %vm106_vm8, %v108_v51, %v104_v52  ;;  %vm117_vm11 = vmor %vm115_vm10, %vm116_vm9 }
 0x125   :  { %v112_v56 = vsub.f32 1.0, %v111_v53  ;;  %v126_v57 = vmul.f32 %v109_v55, %v291_v4 }
 0x127   :  { %v113_v60 = vmul.f32 %v177_v50, %v112_v56  ;;  %v131_v62 = vmul.f32 %v166_v54, %v126_v57 }
 0x129   :  { %v114_v63 = vadd.f32 %v177_v50, %v113_v60  ;;  %v136_v0 = vadd.f32 %v167_v58, %v131_v62 }
 0x12b   :  { %v118_v2 = vsel %vm117_vm11, %v177_v50, %v114_v63  ;;  %138 = vst [vmem:[#allocation7] sm:$0xff] %v136_v0 }
 0x12c   :  { %v123_v3 = vsel %vm120_vm12, %v122_v1, %v118_v2 }
 0x12d   :  { %v127_v4 = vmul.f32 %v123_v3, %v295_v8 }
 0x12f   :  { %v132_v5 = vmul.f32 %v166_v54, %v127_v4 }
 0x131   :  { %v137_v6 = vadd.f32 %v167_v58, %v132_v5 }
 0x133   :  { %139 = vst [vmem:[#allocation7 + $0x8] sm:$0xff] %v137_v6 }
 0x134   :  { %152 = dma.vmem_to_hbm [thread:$0]  %s145_s25, 256, %s147_s27, [#allocation4], %s257_s20, %s257_s20, %s258_s21  }
 0x135   :  { %254 = dma.done.wait [#allocation4], 256  }
 0x136   :  { %255 = vsyncadd [#allocation4], 4294967040 }
 0x137   :  { %157 = vsyncpa [#allocation3], 1 }
 0x138   :  { %158 = vsyncpa [#allocation6], 1 }
 0x139   :  { %159 = vsyncpa [#allocation4], 1 }

</bundles_post_ra>
